<compile_context>
chip_gen: v6e
topology: v6e:2x2x1
jax: 0.10.0
libtpu: 0.0.40
codegen_flags: <defaults>
</compile_context>

<pallas_src>
import jax
import jax.numpy as jnp
import numpy as np
from jax.experimental import pallas as pl
from jax.experimental.pallas import tpu as pltpu

_BN_EPS = 1e-5


# ----------------------------------------------------------------------------
# Kernel
# ----------------------------------------------------------------------------
def _aspp_kernel(x_ref, w1_ref, b1_ref, w2_ref, b2_ref, o_ref):
    # x_ref : (Cin, tn)   spatial tile of one image, channels-major
    # w1_ref: (Ctot, Cin) all stage 1x1 weights stacked on out-channels,
    #                     BN scale already folded in
    # b1_ref: (Ctot, 1)   folded BN shift for the stages
    # w2_ref: (Cin, Ctot) final 1x1 weight, BN scale folded in
    # b2_ref: (Cin, 1)    folded BN shift for the final conv
    x = x_ref[...]
    # all ASPP stages fused: 1x1 conv (+BN scale folded) + bias + ReLU
    t = jnp.dot(w1_ref[...], x, preferred_element_type=jnp.float32)
    t = jnp.maximum(t + b1_ref[...], 0.0)              # (Ctot, tn)
    # final 1x1 conv (+BN scale folded) + bias + ReLU
    o = jnp.dot(w2_ref[...], t, preferred_element_type=jnp.float32)
    o = jnp.maximum(o + b2_ref[...], 0.0)               # (Cin, tn)
    o_ref[...] = o.astype(o_ref.dtype)


# ----------------------------------------------------------------------------
# Parameter handling (raw module params -> folded kernel params)
# ----------------------------------------------------------------------------
def _fold_bn(gamma, beta, mean, var, eps=_BN_EPS):
    scale = gamma / jnp.sqrt(var + eps)
    shift = beta - mean * scale
    return scale, shift


def make_aspp_params(key, in_ch, out_ch, rates):
    """Deterministic synthetic parameters matching _ASPP.__init__ shapes
    (only the parameters that survive the add_module name clash)."""
    n_stages = 1 + len(rates)
    n_keys = 5 * n_stages + 3           # 5 per stage + 3 for final conv/BN
    k_it = iter(jax.random.split(key, n_keys))

    stages = []
    for _ in range(n_stages):
        w = jax.random.normal(next(k_it), (out_ch, in_ch), jnp.float32) * 0.1
        gamma = 1.0 + 0.1 * jax.random.normal(next(k_it), (out_ch,), jnp.float32)
        beta = 0.1 * jax.random.normal(next(k_it), (out_ch,), jnp.float32)
        mean = 0.05 * jax.random.normal(next(k_it), (out_ch,), jnp.float32)
        var = jnp.abs(0.1 * jax.random.normal(next(k_it), (out_ch,), jnp.float32)) + 0.5
        stages.append(dict(w=w, gamma=gamma, beta=beta, mean=mean, var=var))

    wf = jax.random.normal(next(k_it), (in_ch, in_ch), jnp.float32) * 0.1
    gamma_f = 1.0 + 0.1 * jax.random.normal(next(k_it), (in_ch,), jnp.float32)
    beta_f = 0.1 * jax.random.normal(next(k_it), (in_ch,), jnp.float32)
    final = dict(w=wf, gamma=gamma_f, beta=beta_f,
                 mean=jnp.zeros((in_ch,), jnp.float32),
                 var=jnp.ones((in_ch,), jnp.float32))
    return dict(stages=stages, final=final)


def _fold_params(params):
    """Fold eval-mode BN into (weight, bias) for the fused kernel."""
    w_list, b_list = [], []
    for st in params["stages"]:
        sc, sh = _fold_bn(st["gamma"], st["beta"], st["mean"], st["var"])
        w_list.append(st["w"] * sc[:, None])            # (out_ch, in_ch)
        b_list.append(sh)
    w1_eff = jnp.concatenate(w_list, axis=0)            # (Ctot, Cin)
    b1 = jnp.concatenate(b_list, axis=0)[:, None]       # (Ctot, 1)

    f = params["final"]
    sc_f, sh_f = _fold_bn(f["gamma"], f["beta"], f["mean"], f["var"])
    w2_eff = f["w"] * sc_f[:, None]                     # (Cin, Ctot)
    b2 = sh_f[:, None]                                  # (Cin, 1)
    return w1_eff, b1, w2_eff, b2


# ----------------------------------------------------------------------------
# Wrapper
# ----------------------------------------------------------------------------
def aspp_pallas(x_nchw, params, *, tn=512):
    """x_nchw: (N, Cin, H, W). Returns (N, Cin, H, W)."""
    N, Cin, H, W = x_nchw.shape
    w1_eff, b1, w2_eff, b2 = _fold_params(params)
    Ctot = w1_eff.shape[0]
    assert Ctot == Cin, "_ASPP requires in_ch == (len(rates)+1)*out_ch"
    assert w2_eff.shape == (Cin, Ctot)

    HW = H * W
    # spatial tile: multiple of 128, no larger than the padded spatial extent
    tn = max(128, ((tn + 127) // 128) * 128)
    tn = min(tn, ((HW + 127) // 128) * 128)
    hw_pad = pl.cdiv(HW, tn) * tn

    x3 = x_nchw.reshape(N, Cin, HW)                     # free reshape (NCHW)
    if hw_pad != HW:
        x3 = jnp.pad(x3, ((0, 0), (0, 0), (0, hw_pad - HW)))

    grid = (N, hw_pad // tn)
    out3 = pl.pallas_call(
        _aspp_kernel,
        out_shape=jax.ShapeDtypeStruct((N, Cin, hw_pad), x_nchw.dtype),
        grid_spec=pltpu.PrefetchScalarGridSpec(
            num_scalar_prefetch=0,
            grid=grid,
            in_specs=[
                # spatial tile of one image (batch dim squeezed away)
                pl.BlockSpec((pl.Squeezed(), Cin, tn), lambda n, j: (n, 0, j)),
                # grid-invariant operands (fetched once; for large channel
                # counts add pipeline_mode=pl.Buffered(1) + vmem_limit_bytes)
                pl.BlockSpec((Ctot, Cin), lambda n, j: (0, 0)),
                pl.BlockSpec((Ctot, 1), lambda n, j: (0, 0)),
                pl.BlockSpec((Cin, Ctot), lambda n, j: (0, 0)),
                pl.BlockSpec((Cin, 1), lambda n, j: (0, 0)),
            ],
            out_specs=pl.BlockSpec((pl.Squeezed(), Cin, tn),
                                   lambda n, j: (n, 0, j)),
        ),
        compiler_params=pltpu.CompilerParams(
            dimension_semantics=("parallel", "parallel")),
    )(x3, w1_eff, b1, w2_eff, b2)

    if hw_pad != HW:
        out3 = out3[:, :, :HW]
    return out3.reshape(N, Cin, H, W)


# ----------------------------------------------------------------------------
# Pure-JAX reference (un-folded BN, matches the PyTorch eval-mode graph)
# ----------------------------------------------------------------------------
def aspp_reference(x_nchw, params):
    N, Cin, H, W = x_nchw.shape
    x3 = x_nchw.reshape(N, Cin, H * W)

    def bn(y, p):
        inv = 1.0 / jnp.sqrt(p["var"] + _BN_EPS)
        return ((y - p["mean"][None, :, None]) * inv[None, :, None]
                * p["gamma"][None, :, None] + p["beta"][None, :, None])

    outs = []
    for st in params["stages"]:
        y = jnp.einsum("oc,ncs->nos", st["w"], x3)
        outs.append(jnp.maximum(bn(y, st), 0.0))
    t = jnp.concatenate(outs, axis=1)

    f = params["final"]
    o = jnp.einsum("oc,ncs->nos", f["w"], t)
    o = jnp.maximum(bn(o, f), 0.0)
    return o.reshape(N, Cin, H, W)


# ----------------------------------------------------------------------------
if __name__ == "__main__":
    # in_ch must equal (len(rates)+1)*out_ch for _ASPP's final conv.
    N, H, W = 2, 16, 16
    rates = [6, 12, 18]                 # dilation rates (erased by the
                                        # add_module name clash in PyTorch)
    out_ch = 4
    in_ch = (1 + len(rates)) * out_ch   # 16

    key = jax.random.PRNGKey(0)
    kx, kp = jax.random.split(key)
    x = jax.random.normal(kx, (N, in_ch, H, W), jnp.float32)
    params = make_aspp_params(kp, in_ch, out_ch, rates)

    out = jax.block_until_ready(aspp_pallas(x, params))
    ref = aspp_reference(x, params)
    np.testing.assert_allclose(np.asarray(out), np.asarray(ref),
                               rtol=1e-5, atol=1e-5)
    print("KERNEL_OK")
</pallas_src>

<mosaic_0001>
module attributes {stable_mosaic.version = 11 : i64} {
  func.func @_aspp_kernel(%arg0: i32, %arg1: i32, %arg2: memref<1x16x256xf32, #tpu.memory_space<vmem>>, %arg3: memref<16x16xf32, #tpu.memory_space<vmem>>, %arg4: memref<16x1xf32, #tpu.memory_space<vmem>>, %arg5: memref<16x16xf32, #tpu.memory_space<vmem>>, %arg6: memref<16x1xf32, #tpu.memory_space<vmem>>, %arg7: memref<1x16x256xf32, #tpu.memory_space<vmem>>) attributes {dimension_semantics = [#tpu.dimension_semantics<parallel>, #tpu.dimension_semantics<parallel>], iteration_bounds = array<i64: 2, 1>, scalar_prefetch = 0 : i64, scratch_operands = 0 : i64, tpu.core_type = #tpu.core_type<tc>, window_params = [{transform_indices = @transform_0, window_bounds = array<i64: 1, 16, 256>}, {pipeline_mode = #tpu.pipeline_mode<synchronous>, transform_indices = @transform_1, window_bounds = array<i64: 16, 16>}, {pipeline_mode = #tpu.pipeline_mode<synchronous>, transform_indices = @transform_2, window_bounds = array<i64: 16, 1>}, {pipeline_mode = #tpu.pipeline_mode<synchronous>, transform_indices = @transform_3, window_bounds = array<i64: 16, 16>}, {pipeline_mode = #tpu.pipeline_mode<synchronous>, transform_indices = @transform_4, window_bounds = array<i64: 16, 1>}, {transform_indices = @transform_5, window_bounds = array<i64: 1, 16, 256>}]} {
    %c0 = arith.constant 0 : index
    %c0_0 = arith.constant 0 : index
    %c0_1 = arith.constant 0 : index
    %0 = vector.load %arg2[%c0, %c0_0, %c0_1] : memref<1x16x256xf32, #tpu.memory_space<vmem>>, vector<1x16x256xf32>
    %1 = vector.shape_cast %0 : vector<1x16x256xf32> to vector<16x256xf32>
    %c0_2 = arith.constant 0 : index
    %c0_3 = arith.constant 0 : index
    %2 = vector.load %arg3[%c0_2, %c0_3] : memref<16x16xf32, #tpu.memory_space<vmem>>, vector<16x16xf32>
    %cst = arith.constant dense<0.000000e+00> : vector<16x256xf32>
    %3 = tpu.matmul %2, %1, %cst {dimension_numbers = #tpu.dot_dimension_numbers<[1], [0], [0], [1], [0, 0, 1, 1], [], []>} : vector<16x16xf32>, vector<16x256xf32>, vector<16x256xf32> -> vector<16x256xf32>
    %c0_4 = arith.constant 0 : index
    %c0_5 = arith.constant 0 : index
    %4 = vector.load %arg4[%c0_4, %c0_5] : memref<16x1xf32, #tpu.memory_space<vmem>>, vector<16x1xf32>
    %5 = vector.broadcast %4 : vector<16x1xf32> to vector<16x256xf32>
    %6 = arith.addf %3, %5 : vector<16x256xf32>
    %cst_6 = arith.constant 0.000000e+00 : f32
    %7 = vector.broadcast %cst_6 : f32 to vector<16x256xf32>
    %8 = arith.maximumf %6, %7 : vector<16x256xf32>
    %c0_7 = arith.constant 0 : index
    %c0_8 = arith.constant 0 : index
    %9 = vector.load %arg5[%c0_7, %c0_8] : memref<16x16xf32, #tpu.memory_space<vmem>>, vector<16x16xf32>
    %cst_9 = arith.constant dense<0.000000e+00> : vector<16x256xf32>
    %10 = tpu.matmul %9, %8, %cst_9 {dimension_numbers = #tpu.dot_dimension_numbers<[1], [0], [0], [1], [0, 0, 1, 1], [], []>} : vector<16x16xf32>, vector<16x256xf32>, vector<16x256xf32> -> vector<16x256xf32>
    %c0_10 = arith.constant 0 : index
    %c0_11 = arith.constant 0 : index
    %11 = vector.load %arg6[%c0_10, %c0_11] : memref<16x1xf32, #tpu.memory_space<vmem>>, vector<16x1xf32>
    %12 = vector.broadcast %11 : vector<16x1xf32> to vector<16x256xf32>
    %13 = arith.addf %10, %12 : vector<16x256xf32>
    %cst_12 = arith.constant 0.000000e+00 : f32
    %14 = vector.broadcast %cst_12 : f32 to vector<16x256xf32>
    %15 = arith.maximumf %13, %14 : vector<16x256xf32>
    %c0_13 = arith.constant 0 : index
    %c0_14 = arith.constant 0 : index
    %c0_15 = arith.constant 0 : index
    %16 = vector.load %arg7[%c0_13, %c0_14, %c0_15] : memref<1x16x256xf32, #tpu.memory_space<vmem>>, vector<1x16x256xf32>
    %17 = vector.shape_cast %16 : vector<1x16x256xf32> to vector<16x256xf32>
    %18 = vector.shape_cast %15 : vector<16x256xf32> to vector<1x16x256xf32>
    tpu.vector_store %arg7[%c0_13, %c0_14, %c0_15], %18 {strides = array<i32>} : memref<1x16x256xf32, #tpu.memory_space<vmem>>, vector<1x16x256xf32>,
    return
  }
  func.func @transform_0(%arg0: i32, %arg1: i32) -> (i32, i32, i32) {
    %c0_i32 = arith.constant 0 : i32
    %c0_i32_0 = arith.constant 0 : i32
    return %arg0, %c0_i32, %arg1 : i32, i32, i32
  }
  func.func @transform_1(%arg0: i32, %arg1: i32) -> (i32, i32) {
    %c0_i32 = arith.constant 0 : i32
    %c0_i32_0 = arith.constant 0 : i32
    %c0_i32_1 = arith.constant 0 : i32
    return %c0_i32, %c0_i32_0 : i32, i32
  }
  func.func @transform_2(%arg0: i32, %arg1: i32) -> (i32, i32) {
    %c0_i32 = arith.constant 0 : i32
    %c0_i32_0 = arith.constant 0 : i32
    %c0_i32_1 = arith.constant 0 : i32
    return %c0_i32, %c0_i32_0 : i32, i32
  }
  func.func @transform_3(%arg0: i32, %arg1: i32) -> (i32, i32) {
    %c0_i32 = arith.constant 0 : i32
    %c0_i32_0 = arith.constant 0 : i32
    %c0_i32_1 = arith.constant 0 : i32
    return %c0_i32, %c0_i32_0 : i32, i32
  }
  func.func @transform_4(%arg0: i32, %arg1: i32) -> (i32, i32) {
    %c0_i32 = arith.constant 0 : i32
    %c0_i32_0 = arith.constant 0 : i32
    %c0_i32_1 = arith.constant 0 : i32
    return %c0_i32, %c0_i32_0 : i32, i32
  }
  func.func @transform_5(%arg0: i32, %arg1: i32) -> (i32, i32, i32) {
    %c0_i32 = arith.constant 0 : i32
    %c0_i32_0 = arith.constant 0 : i32
    return %arg0, %c0_i32, %arg1 : i32, i32, i32
  }
}

</mosaic_0001>

<bundles_post_ra>
// kernel: tpu_custom_call.1
= control target key start
LH: loop header
LB: loop body
LE: loop exit
PB: predicated region body
PF: predicated region fallthrough
CT: control target
= control target key end

     0   :  { %10 = vsyncpa [#allocation3], 0  ;;  %s994_s0 = inlined_call_operand.hbm [shape: f32[2,16,256], index: 0, kind: input, shape index: {}]   ;;  %s995_s1 = inlined_call_operand.vmem [shape: f32[16,16], index: 1, kind: input, shape index: {}]   ;;  %s996_s2 = inlined_call_operand.vmem [shape: f32[16,1], index: 2, kind: input, shape index: {}]   ;;  %s997_s3 = inlined_call_operand.vmem [shape: f32[16,16], index: 3, kind: input, shape index: {}]   ;;  %s998_s4 = inlined_call_operand.vmem [shape: f32[16,1], index: 4, kind: input, shape index: {}]   ;;  %s999_s5 = inlined_call_operand.hbm [shape: f32[2,16,256], index: 5, kind: output, shape index: {}]  }
   0x1   :  { %12 = vsyncpa [#allocation3 + $0x1], 0 }
   0x2   :  { %13 = vsyncpa [#allocation4], 0 }
   0x3   :  { %15 = vsyncpa [#allocation4 + $0x1], 0  ;;  %s816_s18 = smov 0   ;;  %s818_s19 = smov 0  }
   0x4   :  { %s820_s20 = smov 0   ;;  %s822_s21 = smov 0  }
   0x5   :  { %s824_s22 = smov 0   ;;  %s826_s23 = smov 0  }
   0x6 LB: > { %s577_s24 = sadd.s32 4294967295, %s776_s23   ;;  %s578_s25 = sadd.s32 4294967294, %s776_s23   ;;  %s776_s23 = sphi %s826_s23, %s21_s23   ;;  %s772_s22 = sphi %s824_s22, %s1010_s22   ;;  %s768_s21 = sphi %s822_s21, %s1009_s21   ;;  %s764_s20 = sphi %s820_s20, %s1008_s20   ;;  %s760_s19 = sphi %s818_s19, %s1007_s19   ;;  %s756_s18 = sphi %s816_s18, %s1006_s18  }
   0x7   : > { %s33_s26 = sadd.s32 1, %s772_s22  ;;  %s42_s27 = sadd.s32 1, %s764_s20 }
   0x8   : > { %p35_p0 = scmp.ge.s32.totalorder %s33_s26, 2  ;;  %p49_p1 = scmp.ne.s32.totalorder %s764_s20, %s760_s19 }
   0x9   : > { %p50_p2 = scmp.eq.s32.totalorder %s776_s23, 0  ;;  %p55_p3 = scmp.ne.s32.totalorder %s760_s19, %s756_s18 }
   0xa   : > { %s1012_s26 = smov (%p35_p0, %s33_s26), 0  ;;  %p56_p5 = scmp.eq.s32.totalorder %s577_s24, 0 }
   0xb   : > { %p857_p4 = por %p50_p2, %p49_p1  ;;  %s37_s29 = ssub.s32 %s772_s22, %s1012_s26 }
   0xc   : > { %p165_p6 = scmp.eq.s32.totalorder %s577_s24, 1  ;;  %p40_p7 = scmp.eq.s32.totalorder %s37_s29, 0 }
   0xd   : > { %p863_p8 = por %p56_p5, %p55_p3  ;;  %p171_p10 = scmp.eq.s32.totalorder %s578_s25, 1 }
   0xe   : > { %p867_p9 = por %p165_p6, %p49_p1  ;;  %p610_p13 = scmp.lt.s32.totalorder %s776_s23, 2 }
   0xf   : > { %s872_s7 = scalar_select %p40_p7, %s764_s20, %s42_s27  }
  0x10   : > { %p874_p11 = por %p171_p10, %p55_p3  ;;  %s203_s9 = sand.u32 1, %s764_s20  }
  0x11   : > { %s581_s10 = sshll.u32 %s203_s9, 5  ;;  %s596_s11 = sshll.u32 %s772_s22, 9 }
  0x12   : > { %s215_s14 = scalar_lea.hbm %s994_s0, %s596_s11  ;;  %s207_s15 = scalar_lea.vmem [#allocation2], %s581_s10 }
  0x13   : > { %s216_s16 = sshll.u32 %s207_s15, 4  ;;  %p887_p0 = pnand %p610_p13, %p857_p4  ;;  %s217_s16 = int_to_ptr.vmem [resolvable:$true] %s216_s16 }
  0x14   : > { %p584_p1 = scmp.ge.s32.totalorder %s776_s23, 1  ;;  %s204_s24 = scalar_lea.sflag [#allocation3], %s203_s9 }
  0x15   : > { %p670_p2 = pneg %p887_p0  ;;  %s681_s25 = scalar_lea.vmem %s217_s16, 512 }
  0x16   : > { %p682_p3 = scmp.ne.s32.totalorder %s217_s16, %s681_s25  ;;  %s778_s27 = smov [#allocation2]  }
  0x17   : > { %s686_s29 = sshll.u32 %s778_s27, 4  ;;  %s687_s29 = int_to_ptr.vmem [resolvable:$false] %s686_s29 }
  0x18   : > { %p684_p5 = pnand %p682_p3, %p670_p2  ;;  %s688_s10 = scalar_lea.vmem %s687_s29, 1024 }
  0x19   : > { %p689_p7 = scmp.lt.s32.totalorder %s217_s16, %s687_s29  ;;  %p690_p10 = scmp.lt.s32.totalorder %s688_s10, %s681_s25 }
  0x1a   : > { %p685_p6 = pneg %p684_p5 }
  0x1b   : > { %p691_p12 = por %p690_p10, %p689_p7 }
  0x1d   : > { %p692_p4 = pnand %p691_p12, %p685_p6 }
  0x1f   : > { %695 = shalt.err (!%p692_p4)
}
  0x20   : > { %s779_s28 = smov 256   ;;  %s780_s9 = smov 16  }
  0x21   : > { %605 = dma.hbm_to_vmem [thread:$0]  (!%p887_p0), %s215_s14, 512, %s217_s16, %s204_s24, %s779_s28, %s779_s28, %s780_s9  }
  0x22   : > { %p224_p13 = scmp.lt.s32.totalorder %s776_s23, 3 }
  0x24   : > { %p225_p2 = pnand %p584_p1, %p224_p13 }
  0x25   : > { %s900_s11 = sand.u32 (!%p225_p2), 1, %s760_s19  }
  0x26   : > { %228 = sbr.rel (%p225_p2) target bundleno = 475 (0x1db), region = 40  ;;  %s585_s12 = sshll.u32 (!%p225_p2), %s900_s11, 5 }
  0x27   : > { %s231_s13 = scalar_lea.sflag (!%p225_p2), [#allocation3], %s900_s11  ;;  %s234_s15 = scalar_lea.vmem (!%p225_p2), [#allocation2], %s585_s12 }
  0x2b   : > { %747 = dma.done.wait (%p863_p8), %s231_s13, 512  }
  0x2c   : > { %749 = vsyncadd (%p863_p8), %s231_s13, 4294966784  ;;  %v781_v0 = vmov 0.0   ;;  %v782_v1 = vmov 0   ;;  %v266_v2 = vld [vmem:[%s234_s15 + $0x18] sm:$0xff]  ;;  %v265_v3 = vld [vmem:[%s234_s15 + $0x10] sm:$0xff]  ;;  %vm281_vm0 = vcmask 130048  }
  0x2d   : > { %352 = vmatprep.mubr.f32.mxu0 %v781_v0  ;;  %666 = vset.pattern.permute.xlu0 %v782_v1  ;;  %v264_v4 = vld [vmem:[%s234_s15 + $0x8] sm:$0xff]  ;;  %v263_v5 = vld [vmem:[%s234_s15] sm:$0xff]  ;;  %s260_s30 = scalar_lea.vmem [#allocation5], %s585_s12  ;;  %s597_s25 = sshll.u32 %s768_s21, 9 }
  0x2e   : > { %453 = vmatprep.mubr.f32.mxu1 %v781_v0  ;;  %667 = vset.pattern.permute.xlu1 %v782_v1  ;;  %v267_v6 = vld [vmem:[%s995_s1] sm:$0xff]  ;;  %v270_v7 = vld [vmem:[%s996_s2 + $0x8] sm:$0xff]  ;;  %s490_s24 = sshll.u32 %s260_s30, 4  ;;  %s946_s29 = scalar_lea.hbm %s999_s5, %s597_s25  ;;  %s941_s24 = int_to_ptr.vmem [resolvable:$true] %s490_s24 }
  0x2f   : > { %316 = vmatprep.subr.mxu0 %v266_v2  ;;  %278 = vperm.xlu0 %666, %v270_v7   ;;  %v269_v8 = vld [vmem:[%s996_s2] sm:$0xff]  ;;  %v268_v9 = vld [vmem:[%s995_s1 + $0x8] sm:$0xff]  ;;  %s475_s10 = scalar_lea.sflag [#allocation4], %s900_s11  ;;  %s696_s28 = scalar_lea.vmem %s941_s24, 512 }
  0x30   : > { %317 = vmatpush1.msra.mxu0 %v265_v3  ;;  %v371_v10 = vld [vmem:[%s998_s4] sm:$0xff]  ;;  %v372_v11 = vld [vmem:[%s998_s4 + $0x8] sm:$0xff]  ;;  %p697_p8 = scmp.ne.s32.totalorder %s941_s24, %s696_s28  ;;  %s783_s21 = smov [#allocation5]  }
  0x31   : > { %318 = vmatprep.subr.mxu0 %v264_v4  ;;  %375 = vperm.xlu1 %667, %v371_v10   ;;  %v369_v26 = vld [vmem:[%s997_s3] sm:$0xff]  ;;  %v370_v27 = vld [vmem:[%s997_s3 + $0x8] sm:$0xff]  ;;  %s700_s9 = sshll.u32 %s783_s21, 4  ;;  %s701_s9 = int_to_ptr.vmem [resolvable:$false] %s700_s9 }
  0x32   : > { %319 = vmatpush1.msra.mxu0 %v263_v5  ;;  %p698_p12 = pnand %p697_p8, %p867_p9  ;;  %s702_s13 = scalar_lea.vmem %s701_s9, 1024 }
  0x33   : > { %587 = vmatmul.mubr.msk.f32.vlgmr.msra.gmra.mxu0 %vm281_vm0, %v267_v6  ;;  %273 = vperm.xlu0 %666, %v269_v8   ;;  %p703_p1 = scmp.lt.s32.totalorder %s941_s24, %s701_s9  ;;  %p704_p3 = scmp.lt.s32.totalorder %s702_s13, %s696_s28 }
  0x34   : > { %358 = vmatprep.mubr.f32.mxu0 %v781_v0  ;;  %p699_p0 = pneg %p698_p12 }
  0x35   : > { %380 = vperm.xlu1 %667, %v372_v11   ;;  %p705_p5 = por %p704_p3, %p703_p1 }
  0x37   : > { %588 = vmatmul.mubr.msk.f32.gmra.mxu0 %vm281_vm0, %v268_v9  ;;  %p706_p6 = pnand %p705_p5, %p699_p0 }
  0xaa   : > { %v279_v12 = vpop.permute.xlu0 %278 }
  0xac   : > { %v376_v28 = vpop.permute.xlu1 %375 }
  0xae   : > { %v274_v16 = vpop.permute.xlu0 %273 }
  0xb0   : > { %v381_v34 = vpop.permute.xlu1 %380 }
  0xf3   : > { %v354_v13 = vpop.f32.mrf.mxu0 }
  0xf4   : > { %v355_v21 = vadd.f32 %v354_v13, %v274_v16 }
  0xf5   : > { %v356_v14 = vpop.f32.mrf.mxu0 }
  0xf6   : > { %v357_v19 = vadd.f32 %v356_v14, %v274_v16  ;;  %v365_v25 = vmax.f32 %v355_v21, 0.0 }
  0xf7   : > { %v360_v15 = vpop.f32.mrf.mxu0 }
  0xf8   : > { %v361_v17 = vadd.f32 %v360_v15, %v279_v12  ;;  %v366_v24 = vmax.f32 %v357_v19, 0.0 }
  0xf9   : > { %v362_v18 = vpop.f32.mrf.mxu0 }
  0xfa   : > { %v363_v20 = vadd.f32 %v362_v18, %v279_v12  ;;  %v367_v23 = vmax.f32 %v361_v17, 0.0 }
  0xfc   : > { %v368_v22 = vmax.f32 %v363_v20, 0.0 }
  0xfe   : > { %417 = vmatprep.subr.mxu1 %v368_v22 }
  0xff   : > { %418 = vmatpush1.msra.mxu1 %v367_v23 }
 0x100   : > { %419 = vmatprep.subr.mxu1 %v366_v24 }
 0x101   : > { %420 = vmatpush1.msra.mxu1 %v365_v25 }
 0x102   : > { %589 = vmatmul.mubr.msk.f32.vlgmr.msra.gmra.mxu1 %vm281_vm0, %v369_v26 }
 0x103   : > { %459 = vmatprep.mubr.f32.mxu1 %v781_v0 }
 0x106   : > { %590 = vmatmul.mubr.msk.f32.gmra.mxu1 %vm281_vm0, %v370_v27 }
 0x1c2   : > { %v455_v29 = vpop.f32.mrf.mxu1 }
 0x1c3   : > { %v456_v30 = vadd.f32 %v455_v29, %v376_v28 }
 0x1c4   : > { %v457_v31 = vpop.f32.mrf.mxu1 }
 0x1c5   : > { %v466_v32 = vmax.f32 %v456_v30, 0.0  ;;  %v458_v33 = vadd.f32 %v457_v31, %v376_v28 }
 0x1c6   : > { %v461_v35 = vpop.f32.mrf.mxu1 }
 0x1c7   : > { %470 = vst [vmem:[%s260_s30] sm:$0xff] %v466_v32  ;;  %v467_v36 = vmax.f32 %v458_v33, 0.0  ;;  %v462_v37 = vadd.f32 %v461_v35, %v381_v34 }
 0x1c8   : > { %v463_v38 = vpop.f32.mrf.mxu1 }
 0x1c9   : > { %471 = vst [vmem:[%s260_s30 + $0x8] sm:$0xff] %v467_v36  ;;  %v468_v39 = vmax.f32 %v462_v37, 0.0  ;;  %v464_v40 = vadd.f32 %v463_v38, %v381_v34 }
 0x1cb   : > { %472 = vst [vmem:[%s260_s30 + $0x10] sm:$0xff] %v468_v39  ;;  %v469_v41 = vmax.f32 %v464_v40, 0.0 }
 0x1cd   : > { %473 = vst [vmem:[%s260_s30 + $0x18] sm:$0xff] %v469_v41 }
 0x1ce   : > { %709 = shalt.err (!%p706_p6)
}
 0x1cf   : > { %s710_s15 = scalar_lea.hbm %s946_s29, 512  ;;  %s714_s17 = scalar_lea.hbm %s999_s5, 1024 }
 0x1d0   : > { %p711_p7 = scmp.ne.s32.totalorder %s946_s29, %s710_s15  ;;  %p715_p13 = scmp.lt.s32.totalorder %s946_s29, %s999_s5 }
 0x1d1   : > { %p716_p2 = scmp.lt.s32.totalorder %s714_s17, %s710_s15 }
 0x1d2   : > { %p712_p10 = pnand %p711_p7, %p867_p9 }
 0x1d3   : > { %p717_p8 = por %p716_p2, %p715_p13 }
 0x1d4   : > { %p713_p4 = pneg %p712_p10 }
 0x1d6   : > { %p718_p12 = pnand %p717_p8, %p713_p4 }
 0x1d8   : > { %721 = shalt.err (!%p718_p12)
}
 0x1d9   : > { %s784_s27 = smov 256   ;;  %s785_s12 = smov 16  }
 0x1da   : > { %600 = dma.vmem_to_hbm [thread:$0]  (%p867_p9), %s941_s24, 512, %s946_s29, %s475_s10, %s784_s27, %s784_s27, %s785_s12  }
 0x1db PF: > { %s505_s28 = sand.u32 1, %s756_s18   ;;  %p1005_p0 = scmp.ge.s32.totalorder %s776_s23, 2 }
 0x1dc   : > { %s506_s21 = scalar_lea.sflag [#allocation4], %s505_s28 }
 0x1dd   : > { %p607_p1 = pnand %p1005_p0, %p874_p11 }
 0x1df   : > { %p608_p3 = pneg %p607_p1 }
 0x1e1   : > { %751 = dma.done.wait (%p608_p3), %s506_s21, 512  }
 0x1e2   : > { %753 = vsyncadd (%p608_p3), %s506_s21, 4294966784  ;;  %s21_s23 = sadd.s32 1, %s776_s23   ;;  %s1006_s18 = smov %s760_s19 }
 0x1e3   : > { %p18_p5 = scmp.ge.s32.totalorder %s21_s23, 4   ;;  %s1007_s19 = smov %s764_s20 }
 0x1e4   : > { %s1008_s20 = smov %s872_s7  ;;  %s1009_s21 = smov %s772_s22 }
 0x1e5   : > { %s1010_s22 = smov %s1012_s26  ;;  %20 = sbr.rel (!%p18_p5) target bundleno = 6 (0x6), region = 85 }
 0x1ea   :  { %511 = vsyncpa [#allocation3], 1 }
 0x1eb   :  { %513 = vsyncpa [#allocation3 + $0x1], 1 }
 0x1ec   :  { %514 = vsyncpa [#allocation4], 1 }
 0x1ed   :  { %516 = vsyncpa [#allocation4 + $0x1], 1 }

</bundles_post_ra>
